<compile_context>
chip_gen: v6e
topology: v6e:2x2x1
jax: 0.10.0
libtpu: 0.0.40
codegen_flags: <defaults>
</compile_context>

<pallas_src>
import functools

import jax
import jax.numpy as jnp
import numpy as np
from jax.experimental import pallas as pl
from jax.experimental.pallas import tpu as pltpu


# ---------------------------------------------------------------------------
# Fused kernel: conv(+BN,ReLU,MaxPool,flatten) + fc1(+ReLU) + fc2.
# One batch tile of B examples per grid step; three well-shaped GEMMs, no
# loops, no reshapes.
# ---------------------------------------------------------------------------
def _fused_cnn2d_kernel(x_ref, wconv_ref, shift_ref, w1_ref, b1_ref,
                        w2_ref, b2_ref, o_ref, *, hwc):
    """Shapes (default config, B = batch tile):
      x_ref    : (B, Cin*H*W)          bf16  flattened NCHW input
      wconv_ref: (Cin*H*W, 2*HWC)      bf16  structured conv weight (BN folded,
                                             even/odd MaxPool split in lanes)
      shift_ref: (1, 2*HWC)            f32   conv bias + BN shift per lane
      w1_ref   : (HWC, D)              bf16  fc1, columns in (h, w, c) order
      b1_ref   : (1, D)  f32;  w2_ref: (D, 2) f32;  b2_ref: (1, 2) f32
      o_ref    : (B, 2)                f32
    """
    # conv + folded BN as one GEMM; lanes [:hwc] = even columns, [hwc:] = odd.
    acc = jnp.dot(x_ref[...], wconv_ref[...],
                  preferred_element_type=jnp.float32)          # (B, 2*HWC)
    act = jnp.maximum(acc + shift_ref[...], 0.0)               # bias+BN, ReLU
    feat = jnp.maximum(act[:, :hwc], act[:, hwc:])             # MaxPool2d((1,2))
    feat = feat.astype(w1_ref.dtype)                           # (B, HWC) bf16

    # fc1 + ReLU (Dropout is identity in eval mode).
    # TODO(synk): train-mode Dropout masking is not implemented.
    h1 = jnp.dot(feat, w1_ref[...],
                 preferred_element_type=jnp.float32) + b1_ref[...]
    h1 = jnp.maximum(h1, 0.0)                                  # (B, D)

    # fc2 (tiny; kept f32).
    o_ref[...] = jnp.dot(h1, w2_ref[...],
                         preferred_element_type=jnp.float32) + b2_ref[...]


# ---------------------------------------------------------------------------
# One-time host-side weight preparation (hoisted out of the forward).
# ---------------------------------------------------------------------------
def pack_params(p, *, in_size=(1, 8, 16), eps=1e-5, dtype=jnp.bfloat16):
    cin, H, W = in_size
    cw = np.asarray(p["conv_w"], np.float32)          # (Cout, Cin, KH, KW)
    cout, wcin, KH, KW = cw.shape
    assert wcin == cin, "conv in_channels must match input channels"
    ph, pw = KH // 2, KW // 2                         # Conv2d(padding=k//2)
    Wout = W // 2                                     # MaxPool2d((1,2),(1,2))
    D = p["fc1_w"].shape[0]
    HWC = H * Wout * cout
    # Single conv stage (conv_channels=[cin, cout]) -> flat_fts must match.
    assert p["fc1_w"].shape[1] == HWC, "fc1 in_features != cout*H*(W//2)"

    gamma = np.asarray(p["bn_gamma"], np.float32)
    beta = np.asarray(p["bn_beta"], np.float32)
    mean = np.asarray(p["bn_mean"], np.float32)
    var = np.asarray(p["bn_var"], np.float32)
    cb = np.asarray(p["conv_b"], np.float32)
    scale = gamma / np.sqrt(var + eps)                # eval-mode BN
    shift = beta + (cb - mean) * scale                # conv bias + BN shift
    ws = cw * scale[:, None, None, None]              # BN scale folded in

    # Structured conv weight A: (Cin*H*W) -> (2 * H*Wout*Cout) lanes.
    #   input index  = ci*H*W + hi*W + wi                  (torch NCHW flatten)
    #   output lane  = ((par*H + ho)*Wout + wo)*Cout + co
    # par in {0,1} is the even/odd conv column feeding MaxPool2d((1,2));
    # "same" zero padding is baked in by simply dropping out-of-range taps.
    A = np.zeros((cin, H, W, 2, H, Wout, cout), np.float32)
    for par in range(2):
        for dy in range(KH):
            for dx in range(KW):
                for ho in range(H):
                    hi = ho + dy - ph
                    if not (0 <= hi < H):
                        continue
                    for wo in range(Wout):
                        wi = 2 * wo + par + dx - pw
                        if not (0 <= wi < W):
                            continue
                        A[:, hi, wi, par, ho, wo, :] += ws[:, :, dy, dx].T
    wconv = A.reshape(cin * H * W, 2 * HWC)

    shift_row = np.tile(shift, 2 * H * Wout).reshape(1, 2 * HWC)

    # fc1: torch flattens pooled features in (c, h, w) order; permute columns
    # to the kernel's (h, w, c) lane order and pre-transpose to (HWC, D).
    w1 = np.asarray(p["fc1_w"], np.float32).reshape(D, cout, H, Wout)
    w1 = np.transpose(w1, (2, 3, 1, 0)).reshape(HWC, D)

    return {
        "meta": dict(cin=cin, H=H, W=W, cout=cout, Wout=Wout, D=D, HWC=HWC),
        "wconv": jnp.asarray(wconv, dtype),
        "shift": jnp.asarray(shift_row, jnp.float32),
        "w1": jnp.asarray(w1, dtype),
        "b1": jnp.asarray(np.asarray(p["fc1_b"], np.float32).reshape(1, D)),
        "w2": jnp.asarray(np.asarray(p["fc2_w"], np.float32).T),   # (D, 2)
        "b2": jnp.asarray(np.asarray(p["fc2_b"], np.float32).reshape(1, 2)),
        "x_dtype": dtype,
    }


def _pick_batch_tile(n, block_b):
    """Batch-tile size: big enough to fill MXU rows, >=2 blocks at moderate N
    so v7x's two TensorCores both get work, sublane (8) aligned."""
    if n <= 8:
        return n                              # one small full-dim block
    b = min(block_b, -(-n // 2))              # at least 2 grid blocks
    return -(-b // 8) * 8                     # align to sublanes


# ---------------------------------------------------------------------------
# Forward: flatten the input, then one fused, batched pallas_call.
# ---------------------------------------------------------------------------
def cnn2d_forward(x, packed, *, block_b=512):
    m = packed["meta"]
    N = x.shape[0]
    K = m["cin"] * m["H"] * m["W"]
    HWC, D = m["HWC"], m["D"]

    B = _pick_batch_tile(N, block_b)
    n_blocks = pl.cdiv(N, B)
    Npad = n_blocks * B

    # Only per-call glue: flatten NCHW -> (N, Cin*H*W) and cast to bf16.
    # No padding, no im2col, no activation transposes.
    xflat = x.reshape(N, K).astype(packed["x_dtype"])
    if Npad != N:
        xflat = jnp.pad(xflat, ((0, Npad - N), (0, 0)))

    out = pl.pallas_call(
        functools.partial(_fused_cnn2d_kernel, hwc=HWC),
        grid=(n_blocks,),
        in_specs=[
            pl.BlockSpec((B, K), lambda n: (n, 0)),
            pl.BlockSpec((K, 2 * HWC), lambda n: (0, 0)),
            pl.BlockSpec((1, 2 * HWC), lambda n: (0, 0)),
            pl.BlockSpec((HWC, D), lambda n: (0, 0)),
            pl.BlockSpec((1, D), lambda n: (0, 0)),
            pl.BlockSpec((D, 2), lambda n: (0, 0)),
            pl.BlockSpec((1, 2), lambda n: (0, 0)),
        ],
        out_specs=pl.BlockSpec((B, 2), lambda n: (n, 0)),
        out_shape=jax.ShapeDtypeStruct((Npad, 2), jnp.float32),
        compiler_params=pltpu.CompilerParams(
            dimension_semantics=("parallel",),
            vmem_limit_bytes=32 * 1024 * 1024),
    )(xflat, packed["wconv"], packed["shift"], packed["w1"],
      packed["b1"], packed["w2"], packed["b2"])
    return out[:N]


# ---------------------------------------------------------------------------
# Pure-JAX reference (correctness check of the Pallas kernel)
# ---------------------------------------------------------------------------
def reference_forward(x, p, eps=1e-5):
    y = jax.lax.conv_general_dilated(
        x, p["conv_w"], window_strides=(1, 1), padding=((1, 1), (1, 1)),
        dimension_numbers=("NCHW", "OIHW", "NCHW"))
    y = y + p["conv_b"][None, :, None, None]
    scale = p["bn_gamma"] / jnp.sqrt(p["bn_var"] + eps)
    shift = p["bn_beta"] - p["bn_mean"] * scale
    y = y * scale[None, :, None, None] + shift[None, :, None, None]
    y = jnp.maximum(y, 0.0)
    y = jax.lax.reduce_window(y, -jnp.inf, jax.lax.max,
                              (1, 1, 1, 2), (1, 1, 1, 2), "VALID")
    f = y.reshape(y.shape[0], -1)
    h = jnp.maximum(f @ p["fc1_w"].T + p["fc1_b"], 0.0)
    return h @ p["fc2_w"].T + p["fc2_b"]


def init_params(key, cin=1, cout=8, k=3, H=8, W=16, dense=256):
    flat_fts = cout * H * (W // 2)            # same-pad conv, maxpool(1,2)
    ks = jax.random.split(key, 10)
    return {
        "conv_w": 0.1 * jax.random.normal(ks[0], (cout, cin, k, k), jnp.float32),
        "conv_b": 0.1 * jax.random.normal(ks[1], (cout,), jnp.float32),
        "bn_gamma": 1.0 + 0.1 * jax.random.normal(ks[2], (cout,), jnp.float32),
        "bn_beta": 0.1 * jax.random.normal(ks[3], (cout,), jnp.float32),
        "bn_mean": 0.1 * jax.random.normal(ks[4], (cout,), jnp.float32),
        "bn_var": jax.random.uniform(ks[5], (cout,), jnp.float32, 0.5, 1.5),
        "fc1_w": 0.05 * jax.random.normal(ks[6], (dense, flat_fts), jnp.float32),
        "fc1_b": 0.05 * jax.random.normal(ks[7], (dense,), jnp.float32),
        "fc2_w": 0.05 * jax.random.normal(ks[8], (2, dense), jnp.float32),
        "fc2_b": 0.05 * jax.random.normal(ks[9], (2,), jnp.float32),
    }


if __name__ == "__main__":
    key = jax.random.PRNGKey(0)
    k_x, k_p = jax.random.split(key)

    N, Cin, H, W = 2, 1, 8, 16          # module default input_size=(1, 8, 16)
    DENSE = 256                         # module default dense_size
    x = jax.random.normal(k_x, (N, Cin, H, W), jnp.float32)
    params = init_params(k_p, cin=Cin, cout=8, k=3, H=H, W=W, dense=DENSE)

    packed = pack_params(params, in_size=(Cin, H, W))   # one-time weight prep

    out = jax.block_until_ready(cnn2d_forward(x, packed))
    assert out.shape == (N, 2), out.shape
    ref = jax.block_until_ready(reference_forward(x, params))
    # Loose tolerance: conv / fc1 operands are bf16 (f32 accumulation).
    np.testing.assert_allclose(np.asarray(out), np.asarray(ref),
                               rtol=1e-2, atol=1e-2)

    # Second check exercising the multi-block (grid>1) + padded-batch path.
    N2 = 19
    x2 = jax.random.normal(jax.random.PRNGKey(1), (N2, Cin, H, W), jnp.float32)
    out2 = jax.block_until_ready(cnn2d_forward(x2, packed))
    ref2 = jax.block_until_ready(reference_forward(x2, params))
    np.testing.assert_allclose(np.asarray(out2), np.asarray(ref2),
                               rtol=1e-2, atol=1e-2)

    print("KERNEL_OK")
</pallas_src>

<mosaic_0001>
module attributes {stable_mosaic.version = 11 : i64} {
  func.func @_fused_cnn2d_kernel(%arg0: i32, %arg1: memref<2x128xbf16, #tpu.memory_space<vmem>>, %arg2: memref<128x1024xbf16, #tpu.memory_space<vmem>>, %arg3: memref<1x1024xf32, #tpu.memory_space<vmem>>, %arg4: memref<512x256xbf16, #tpu.memory_space<vmem>>, %arg5: memref<1x256xf32, #tpu.memory_space<vmem>>, %arg6: memref<256x2xf32, #tpu.memory_space<vmem>>, %arg7: memref<1x2xf32, #tpu.memory_space<vmem>>, %arg8: memref<2x2xf32, #tpu.memory_space<vmem>>) attributes {dimension_semantics = [#tpu.dimension_semantics<parallel>], iteration_bounds = array<i64: 1>, scalar_prefetch = 0 : i64, scratch_operands = 0 : i64, tpu.core_type = #tpu.core_type<tc>, window_params = [{transform_indices = @transform_0, window_bounds = array<i64: 2, 128>}, {pipeline_mode = #tpu.pipeline_mode<synchronous>, transform_indices = @transform_1, window_bounds = array<i64: 128, 1024>}, {pipeline_mode = #tpu.pipeline_mode<synchronous>, transform_indices = @transform_2, window_bounds = array<i64: 1, 1024>}, {pipeline_mode = #tpu.pipeline_mode<synchronous>, transform_indices = @transform_3, window_bounds = array<i64: 512, 256>}, {pipeline_mode = #tpu.pipeline_mode<synchronous>, transform_indices = @transform_4, window_bounds = array<i64: 1, 256>}, {pipeline_mode = #tpu.pipeline_mode<synchronous>, transform_indices = @transform_5, window_bounds = array<i64: 256, 2>}, {pipeline_mode = #tpu.pipeline_mode<synchronous>, transform_indices = @transform_6, window_bounds = array<i64: 1, 2>}, {transform_indices = @transform_7, window_bounds = array<i64: 2, 2>}]} {
    %c0 = arith.constant 0 : index
    %c0_0 = arith.constant 0 : index
    %0 = vector.load %arg1[%c0, %c0_0] : memref<2x128xbf16, #tpu.memory_space<vmem>>, vector<2x128xbf16>
    %c0_1 = arith.constant 0 : index
    %c0_2 = arith.constant 0 : index
    %1 = vector.load %arg2[%c0_1, %c0_2] : memref<128x1024xbf16, #tpu.memory_space<vmem>>, vector<128x1024xbf16>
    %cst = arith.constant dense<0.000000e+00> : vector<2x1024xf32>
    %2 = tpu.matmul %0, %1, %cst {dimension_numbers = #tpu.dot_dimension_numbers<[1], [0], [0], [1], [0, 0, 1, 1], [], []>} : vector<2x128xbf16>, vector<128x1024xbf16>, vector<2x1024xf32> -> vector<2x1024xf32>
    %c0_3 = arith.constant 0 : index
    %c0_4 = arith.constant 0 : index
    %3 = vector.load %arg3[%c0_3, %c0_4] : memref<1x1024xf32, #tpu.memory_space<vmem>>, vector<1x1024xf32>
    %4 = vector.broadcast %3 : vector<1x1024xf32> to vector<2x1024xf32>
    %5 = arith.addf %2, %4 : vector<2x1024xf32>
    %cst_5 = arith.constant 0.000000e+00 : f32
    %6 = vector.broadcast %cst_5 : f32 to vector<2x1024xf32>
    %7 = arith.maximumf %5, %6 : vector<2x1024xf32>
    %8 = vector.extract_strided_slice %7 {offsets = [0, 0], sizes = [2, 512], strides = [1, 1]} : vector<2x1024xf32> to vector<2x512xf32>
    %9 = vector.extract_strided_slice %7 {offsets = [0, 512], sizes = [2, 512], strides = [1, 1]} : vector<2x1024xf32> to vector<2x512xf32>
    %10 = arith.maximumf %8, %9 : vector<2x512xf32>
    %11 = arith.truncf %10 : vector<2x512xf32> to vector<2x512xbf16>
    %c0_6 = arith.constant 0 : index
    %c0_7 = arith.constant 0 : index
    %12 = vector.load %arg4[%c0_6, %c0_7] : memref<512x256xbf16, #tpu.memory_space<vmem>>, vector<512x256xbf16>
    %cst_8 = arith.constant dense<0.000000e+00> : vector<2x256xf32>
    %13 = tpu.matmul %11, %12, %cst_8 {dimension_numbers = #tpu.dot_dimension_numbers<[1], [0], [0], [1], [0, 0, 1, 1], [], []>} : vector<2x512xbf16>, vector<512x256xbf16>, vector<2x256xf32> -> vector<2x256xf32>
    %c0_9 = arith.constant 0 : index
    %c0_10 = arith.constant 0 : index
    %14 = vector.load %arg5[%c0_9, %c0_10] : memref<1x256xf32, #tpu.memory_space<vmem>>, vector<1x256xf32>
    %15 = vector.broadcast %14 : vector<1x256xf32> to vector<2x256xf32>
    %16 = arith.addf %13, %15 : vector<2x256xf32>
    %cst_11 = arith.constant 0.000000e+00 : f32
    %17 = vector.broadcast %cst_11 : f32 to vector<2x256xf32>
    %18 = arith.maximumf %16, %17 : vector<2x256xf32>
    %c0_12 = arith.constant 0 : index
    %c0_13 = arith.constant 0 : index
    %19 = vector.load %arg6[%c0_12, %c0_13] : memref<256x2xf32, #tpu.memory_space<vmem>>, vector<256x2xf32>
    %cst_14 = arith.constant dense<0.000000e+00> : vector<2x2xf32>
    %20 = tpu.matmul %18, %19, %cst_14 {dimension_numbers = #tpu.dot_dimension_numbers<[1], [0], [0], [1], [0, 0, 1, 1], [], []>} : vector<2x256xf32>, vector<256x2xf32>, vector<2x2xf32> -> vector<2x2xf32>
    %c0_15 = arith.constant 0 : index
    %c0_16 = arith.constant 0 : index
    %21 = vector.load %arg7[%c0_15, %c0_16] : memref<1x2xf32, #tpu.memory_space<vmem>>, vector<1x2xf32>
    %22 = vector.broadcast %21 : vector<1x2xf32> to vector<2x2xf32>
    %23 = arith.addf %20, %22 : vector<2x2xf32>
    %c0_17 = arith.constant 0 : index
    %c0_18 = arith.constant 0 : index
    %24 = vector.load %arg8[%c0_17, %c0_18] : memref<2x2xf32, #tpu.memory_space<vmem>>, vector<2x2xf32>
    tpu.vector_store %arg8[%c0_17, %c0_18], %23 {strides = array<i32>} : memref<2x2xf32, #tpu.memory_space<vmem>>, vector<2x2xf32>,
    return
  }
  func.func @transform_0(%arg0: i32) -> (i32, i32) {
    %c0_i32 = arith.constant 0 : i32
    %c0_i32_0 = arith.constant 0 : i32
    return %arg0, %c0_i32 : i32, i32
  }
  func.func @transform_1(%arg0: i32) -> (i32, i32) {
    %c0_i32 = arith.constant 0 : i32
    %c0_i32_0 = arith.constant 0 : i32
    %c0_i32_1 = arith.constant 0 : i32
    return %c0_i32, %c0_i32_0 : i32, i32
  }
  func.func @transform_2(%arg0: i32) -> (i32, i32) {
    %c0_i32 = arith.constant 0 : i32
    %c0_i32_0 = arith.constant 0 : i32
    %c0_i32_1 = arith.constant 0 : i32
    return %c0_i32, %c0_i32_0 : i32, i32
  }
  func.func @transform_3(%arg0: i32) -> (i32, i32) {
    %c0_i32 = arith.constant 0 : i32
    %c0_i32_0 = arith.constant 0 : i32
    %c0_i32_1 = arith.constant 0 : i32
    return %c0_i32, %c0_i32_0 : i32, i32
  }
  func.func @transform_4(%arg0: i32) -> (i32, i32) {
    %c0_i32 = arith.constant 0 : i32
    %c0_i32_0 = arith.constant 0 : i32
    %c0_i32_1 = arith.constant 0 : i32
    return %c0_i32, %c0_i32_0 : i32, i32
  }
  func.func @transform_5(%arg0: i32) -> (i32, i32) {
    %c0_i32 = arith.constant 0 : i32
    %c0_i32_0 = arith.constant 0 : i32
    %c0_i32_1 = arith.constant 0 : i32
    return %c0_i32, %c0_i32_0 : i32, i32
  }
  func.func @transform_6(%arg0: i32) -> (i32, i32) {
    %c0_i32 = arith.constant 0 : i32
    %c0_i32_0 = arith.constant 0 : i32
    %c0_i32_1 = arith.constant 0 : i32
    return %c0_i32, %c0_i32_0 : i32, i32
  }
  func.func @transform_7(%arg0: i32) -> (i32, i32) {
    %c0_i32 = arith.constant 0 : i32
    %c0_i32_0 = arith.constant 0 : i32
    return %arg0, %c0_i32 : i32, i32
  }
}

</mosaic_0001>

<bundles_post_ra>
// kernel: tpu_custom_call.1
= control target key start
LH: loop header
LB: loop body
LE: loop exit
PB: predicated region body
PF: predicated region fallthrough
CT: control target
= control target key end

     0   :  { %12 = vsyncpa [#allocation3], 0  ;;  %s1797_s0 = inlined_call_operand.vmem [shape: bf16[2,128], index: 0, kind: input, shape index: {}]   ;;  %s1798_s1 = inlined_call_operand.hbm [shape: bf16[128,1024], index: 1, kind: input, shape index: {}]   ;;  %s1799_s2 = inlined_call_operand.vmem [shape: f32[1,1024], index: 2, kind: input, shape index: {}]   ;;  %s1800_s3 = inlined_call_operand.hbm [shape: bf16[512,256], index: 3, kind: input, shape index: {}]   ;;  %s1801_s4 = inlined_call_operand.vmem [shape: f32[1,256], index: 4, kind: input, shape index: {}]   ;;  %s1802_s5 = inlined_call_operand.vmem [shape: f32[256,2], index: 5, kind: input, shape index: {}]   ;;  %s1803_s6 = inlined_call_operand.vmem [shape: f32[1,2], index: 6, kind: input, shape index: {}]   ;;  %s1804_s7 = inlined_call_operand.hbm [shape: f32[2,2], index: 7, kind: output, shape index: {}]  }
   0x1   :  { %13 = vsyncpa [#allocation6], 0 }
   0x2   :  { %14 = vsyncpa [#allocation4], 0  ;;  %s1604_s24 = smov [#allocation2]  }
   0x3   :  { %s22_s25 = sshll.u32 %s1604_s24, 4  ;;  %s23_s25 = int_to_ptr.vmem [resolvable:$true] %s22_s25 }
   0x4   :  { %s1546_s26 = scalar_lea.vmem %s23_s25, 8192  ;;  %p1551_p1 = scmp.lt.s32.totalorder %s23_s25, %s23_s25 }
   0x5   :  { %p1547_p0 = scmp.ne.s32.totalorder %s23_s25, %s1546_s26  ;;  %p1552_p2 = scmp.lt.s32.totalorder %s1546_s26, %s1546_s26 }
   0x7   :  { %p1553_p3 = por %p1552_p2, %p1551_p1 }
   0x9   :  { %p1554_p4 = pnand %p1553_p3, %p1547_p0 }
   0xb   :  { %1557 = shalt.err (!%p1554_p4)
}
   0xc   :  { %s1605_s27 = smov 512   ;;  %s1606_s28 = smov 32  }
   0xd   :  { %28 = dma.hbm_to_vmem [thread:$0]  %s1798_s1, 8192, %s23_s25, [#allocation3], %s1605_s27, %s1605_s27, %s1606_s28  }
   0xe   :  { %s1607_s8 = smov [#allocation5]  }
   0xf   :  { %s36_s9 = sshll.u32 %s1607_s8, 4  ;;  %s37_s9 = int_to_ptr.vmem [resolvable:$true] %s36_s9 }
  0x10   :  { %s1566_s10 = scalar_lea.vmem %s37_s9, 8192  ;;  %p1571_p6 = scmp.lt.s32.totalorder %s37_s9, %s37_s9 }
  0x11   :  { %p1567_p5 = scmp.ne.s32.totalorder %s37_s9, %s1566_s10  ;;  %p1572_p7 = scmp.lt.s32.totalorder %s1566_s10, %s1566_s10 }
  0x13   :  { %p1573_p8 = por %p1572_p7, %p1571_p6 }
  0x15   :  { %p1574_p9 = pnand %p1573_p8, %p1567_p5 }
  0x17   :  { %1577 = shalt.err (!%p1574_p9)
}
  0x18   :  { %s1608_s11 = smov 128   ;;  %s1609_s12 = smov 8  }
  0x19   :  { %42 = dma.hbm_to_vmem [thread:$0]  %s1800_s3, 8192, %s37_s9, [#allocation6], %s1608_s11, %s1608_s11, %s1609_s12  }
  0x1a   :  { %1598 = dma.done.wait [#allocation3], 8192  }
  0x1b   :  { %1599 = vsyncadd [#allocation3], 4294959104 }
  0x1c   :  { %1600 = dma.done.wait [#allocation6], 8192  }
  0x1d   :  { %1601 = vsyncadd [#allocation6], 4294959104  ;;  %v1610_v0 = vmov 0   ;;  %v113_v1 = vld [vmem:[#allocation2 + $0x1c0] sm:$0xff]  ;;  %v114_v3 = vld [vmem:[#allocation2 + $0x1c8] sm:$0xff]  ;;  %s1611_s27 = smov [#allocation7]  }
  0x1e   :  { %515 = vmatprep.mubr.bf16.mxu0 %v1610_v0  ;;  %556 = vmatprep.mubr.bf16.mxu1 %v1610_v0  ;;  %v117_v2 = vld [vmem:[#allocation2 + $0x1e0] sm:$0xff]  ;;  %v118_v5 = vld [vmem:[#allocation2 + $0x1e8] sm:$0xff]  ;;  %v115_v62 = vld [vmem:[#allocation2 + $0x1d0] sm:$0xff]  ;;  %s1260_s28 = sshll.u32 %s1611_s27, 4  ;;  %vm1252_vm0 = vcmask 9216   ;;  %s1261_s28 = int_to_ptr.vmem [resolvable:$true] %s1260_s28 }
  0x1f   :  { %v1327_v4 = vcombine.high %v113_v1, %v117_v2  ;;  %v1326_v6 = vcombine.low %v113_v1, %v117_v2  ;;  %v105_v7 = vld [vmem:[#allocation2 + $0x180] sm:$0xff]  ;;  %v1329_v9 = vcombine.high %v114_v3, %v118_v5  ;;  %v1328_v10 = vcombine.low %v114_v3, %v118_v5  ;;  %v106_v12 = vld [vmem:[#allocation2 + $0x188] sm:$0xff]  ;;  %v119_v1 = vld [vmem:[#allocation2 + $0x1f0] sm:$0xff]  ;;  %s1578_s29 = scalar_lea.vmem %s1261_s28, 32  ;;  %p1583_p11 = scmp.lt.s32.totalorder %s1261_s28, %s1261_s28 }
  0x20   :  { %v109_v8 = vld [vmem:[#allocation2 + $0x1a0] sm:$0xff]  ;;  %v110_v13 = vld [vmem:[#allocation2 + $0x1a8] sm:$0xff]  ;;  %v116_v2 = vld [vmem:[#allocation2 + $0x1d8] sm:$0xff]  ;;  %p1579_p10 = scmp.ne.s32.totalorder %s1261_s28, %s1578_s29  ;;  %p1584_p12 = scmp.lt.s32.totalorder %s1578_s29, %s1578_s29 }
  0x21   :  { %v1319_v11 = vcombine.high %v105_v7, %v109_v8  ;;  %v97_v14 = vld [vmem:[#allocation2 + $0x140] sm:$0xff]  ;;  %483 = vmatprep.subr.bf16.mxu0 %v1327_v4  ;;  %v1321_v15 = vcombine.high %v106_v12, %v110_v13  ;;  %v98_v17 = vld [vmem:[#allocation2 + $0x148] sm:$0xff]  ;;  %524 = vmatprep.subr.bf16.mxu1 %v1329_v9  ;;  %v1318_v19 = vcombine.low %v105_v7, %v109_v8  ;;  %v120_v3 = vld [vmem:[#allocation2 + $0x1f8] sm:$0xff] }
  0x22   :  { %v101_v16 = vld [vmem:[#allocation2 + $0x160] sm:$0xff]  ;;  %v102_v18 = vld [vmem:[#allocation2 + $0x168] sm:$0xff]  ;;  %484 = vmatpush1.bf16.msra.mxu0 %v1326_v6  ;;  %525 = vmatpush1.bf16.msra.mxu1 %v1328_v10  ;;  %v1320_v20 = vcombine.low %v106_v12, %v110_v13  ;;  %v1331_v6 = vcombine.high %v115_v62, %v119_v1  ;;  %v107_v7 = vld [vmem:[#allocation2 + $0x190] sm:$0xff]  ;;  %v1333_v8 = vcombine.high %v116_v2, %v120_v3  ;;  %p1585_p13 = por %p1584_p12, %p1583_p11 }
  0x23   :  { %485 = vmatprep.subr.bf16.mxu0 %v1319_v11  ;;  %v1311_v21 = vcombine.high %v97_v14, %v101_v16  ;;  %526 = vmatprep.subr.bf16.mxu1 %v1321_v15  ;;  %v1313_v22 = vcombine.high %v98_v17, %v102_v18  ;;  %v89_v23 = vld [vmem:[#allocation2 + $0x100] sm:$0xff]  ;;  %v90_v25 = vld [vmem:[#allocation2 + $0x108] sm:$0xff]  ;;  %v1310_v27 = vcombine.low %v97_v14, %v101_v16  ;;  %v111_v9 = vld [vmem:[#allocation2 + $0x1b0] sm:$0xff] }
  0x24   :  { %v93_v24 = vld [vmem:[#allocation2 + $0x120] sm:$0xff]  ;;  %v94_v26 = vld [vmem:[#allocation2 + $0x128] sm:$0xff]  ;;  %v1312_v28 = vcombine.low %v98_v17, %v102_v18  ;;  %v108_v10 = vld [vmem:[#allocation2 + $0x198] sm:$0xff]  ;;  %v1330_v13 = vcombine.low %v115_v62, %v119_v1  ;;  %v1332_v14 = vcombine.low %v116_v2, %v120_v3  ;;  %v1323_v15 = vcombine.high %v107_v7, %v111_v9  ;;  %p1586_p0 = pnand %p1585_p13, %p1579_p10 }
  0x25   :  { %v1303_v29 = vcombine.high %v89_v23, %v93_v24  ;;  %v1305_v30 = vcombine.high %v90_v25, %v94_v26  ;;  %v81_v31 = vld [vmem:[#allocation2 + $0xc0] sm:$0xff]  ;;  %v82_v33 = vld [vmem:[#allocation2 + $0xc8] sm:$0xff]  ;;  %v1302_v35 = vcombine.low %v89_v23, %v93_v24  ;;  %v1304_v36 = vcombine.low %v90_v25, %v94_v26  ;;  %v112_v11 = vld [vmem:[#allocation2 + $0x1b8] sm:$0xff] }
  0x26   :  { %486 = vmatpush1.bf16.msra.mxu0 %v1318_v19  ;;  %527 = vmatpush1.bf16.msra.mxu1 %v1320_v20  ;;  %v85_v32 = vld [vmem:[#allocation2 + $0xe0] sm:$0xff]  ;;  %v86_v34 = vld [vmem:[#allocation2 + $0xe8] sm:$0xff]  ;;  %v99_v16 = vld [vmem:[#allocation2 + $0x150] sm:$0xff]  ;;  %v1325_v17 = vcombine.high %v108_v10, %v112_v11  ;;  %v1324_v24 = vcombine.low %v108_v10, %v112_v11 }
  0x27   :  { %487 = vmatprep.subr.bf16.mxu0 %v1311_v21  ;;  %528 = vmatprep.subr.bf16.mxu1 %v1313_v22  ;;  %v1295_v37 = vcombine.high %v81_v31, %v85_v32  ;;  %v1297_v38 = vcombine.high %v82_v33, %v86_v34  ;;  %v73_v39 = vld [vmem:[#allocation2 + $0x80] sm:$0xff]  ;;  %v74_v41 = vld [vmem:[#allocation2 + $0x88] sm:$0xff]  ;;  %v1294_v43 = vcombine.low %v81_v31, %v85_v32  ;;  %v103_v18 = vld [vmem:[#allocation2 + $0x170] sm:$0xff] }
  0x28   :  { %v77_v40 = vld [vmem:[#allocation2 + $0xa0] sm:$0xff]  ;;  %v78_v42 = vld [vmem:[#allocation2 + $0xa8] sm:$0xff]  ;;  %v1296_v44 = vcombine.low %v82_v33, %v86_v34  ;;  %v100_v19 = vld [vmem:[#allocation2 + $0x158] sm:$0xff]  ;;  %v1322_v21 = vcombine.low %v107_v7, %v111_v9  ;;  %v1315_v25 = vcombine.high %v99_v16, %v103_v18 }
  0x29   :  { %v1287_v45 = vcombine.high %v73_v39, %v77_v40  ;;  %v1289_v46 = vcombine.high %v74_v41, %v78_v42  ;;  %v65_v47 = vld [vmem:[#allocation2 + $0x40] sm:$0xff]  ;;  %v66_v49 = vld [vmem:[#allocation2 + $0x48] sm:$0xff]  ;;  %v1286_v51 = vcombine.low %v73_v39, %v77_v40  ;;  %v1288_v52 = vcombine.low %v74_v41, %v78_v42  ;;  %v104_v20 = vld [vmem:[#allocation2 + $0x178] sm:$0xff] }
  0x2a   :  { %488 = vmatpush1.bf16.msra.mxu0 %v1310_v27  ;;  %529 = vmatpush1.bf16.msra.mxu1 %v1312_v28  ;;  %v69_v48 = vld [vmem:[#allocation2 + $0x60] sm:$0xff]  ;;  %v70_v50 = vld [vmem:[#allocation2 + $0x68] sm:$0xff]  ;;  %v91_v22 = vld [vmem:[#allocation2 + $0x110] sm:$0xff]  ;;  %v1317_v28 = vcombine.high %v100_v19, %v104_v20  ;;  %v1316_v32 = vcombine.low %v100_v19, %v104_v20 }
  0x2b   :  { %489 = vmatprep.subr.bf16.mxu0 %v1303_v29  ;;  %530 = vmatprep.subr.bf16.mxu1 %v1305_v30  ;;  %v1279_v53 = vcombine.high %v65_v47, %v69_v48  ;;  %v57_v54 = vld [vmem:[#allocation2] sm:$0xff]  ;;  %v1281_v55 = vcombine.high %v66_v49, %v70_v50  ;;  %v58_v57 = vld [vmem:[#allocation2 + $0x8] sm:$0xff]  ;;  %v1278_v59 = vcombine.low %v65_v47, %v69_v48  ;;  %v95_v23 = vld [vmem:[#allocation2 + $0x130] sm:$0xff] }
  0x2c   :  { %v61_v56 = vld [vmem:[#allocation2 + $0x20] sm:$0xff]  ;;  %v62_v58 = vld [vmem:[#allocation2 + $0x28] sm:$0xff]  ;;  %v1280_v60 = vcombine.low %v66_v49, %v70_v50  ;;  %v92_v26 = vld [vmem:[#allocation2 + $0x118] sm:$0xff]  ;;  %v1314_v29 = vcombine.low %v99_v16, %v103_v18  ;;  %v1307_v33 = vcombine.high %v91_v22, %v95_v23 }
  0x2d   :  { %v1271_v61 = vcombine.high %v57_v54, %v61_v56  ;;  %v1273_v63 = vcombine.high %v58_v57, %v62_v58  ;;  %v1270_v4 = vcombine.low %v57_v54, %v61_v56  ;;  %v1272_v5 = vcombine.low %v58_v57, %v62_v58  ;;  %v1663_v12 = vld [vmem:[%s1797_s0] sm:$0x1]  ;;  %v96_v27 = vld [vmem:[#allocation2 + $0x138] sm:$0xff]  ;;  %v83_v30 = vld [vmem:[#allocation2 + $0xd0] sm:$0xff] }
  0x2e   :  { %490 = vmatpush1.bf16.msra.mxu0 %v1302_v35  ;;  %531 = vmatpush1.bf16.msra.mxu1 %v1304_v36  ;;  %v87_v31 = vld [vmem:[#allocation2 + $0xf0] sm:$0xff]  ;;  %v84_v34 = vld [vmem:[#allocation2 + $0xd8] sm:$0xff]  ;;  %v1309_v36 = vcombine.high %v92_v26, %v96_v27  ;;  %v1308_v40 = vcombine.low %v92_v26, %v96_v27  ;;  %v1450_v7 = vld [vmem:[#allocation5 + $0x64] ss:$8 sps:$4 sm:$0xff]  }
  0x2f   :  { %491 = vmatprep.subr.bf16.mxu0 %v1295_v37  ;;  %532 = vmatprep.subr.bf16.mxu1 %v1297_v38  ;;  %v88_v35 = vld [vmem:[#allocation2 + $0xf8] sm:$0xff]  ;;  %v1306_v37 = vcombine.low %v91_v22, %v95_v23  ;;  %v75_v38 = vld [vmem:[#allocation2 + $0x90] sm:$0xff]  ;;  %v1448_v9 = vld [vmem:[#allocation5 + $0x60] ss:$8 sps:$4 sm:$0xff]  }
  0x30   :  { %v79_v39 = vld [vmem:[#allocation2 + $0xb0] sm:$0xff]  ;;  %v76_v41 = vld [vmem:[#allocation2 + $0x98] sm:$0xff]  ;;  %v1451_v10 = vld [vmem:[#allocation5 + $0x160] ss:$8 sps:$4 sm:$0xff]  }
  0x31   :  { %v80_v42 = vld [vmem:[#allocation2 + $0xb8] sm:$0xff]  ;;  %v67_v48 = vld [vmem:[#allocation2 + $0x50] sm:$0xff]  ;;  %v1462_v16 = vld [vmem:[#allocation5 + $0x44] ss:$8 sps:$4 sm:$0xff]  }
  0x32   :  { %492 = vmatpush1.bf16.msra.mxu0 %v1294_v43  ;;  %533 = vmatpush1.bf16.msra.mxu1 %v1296_v44  ;;  %v1301_v43 = vcombine.high %v84_v34, %v88_v35  ;;  %v1298_v44 = vcombine.low %v83_v30, %v87_v31  ;;  %v1293_v47 = vcombine.high %v76_v41, %v80_v42  ;;  %v71_v49 = vld [vmem:[#allocation2 + $0x70] sm:$0xff]  ;;  %v68_v50 = vld [vmem:[#allocation2 + $0x58] sm:$0xff]  ;;  %v1460_v18 = vld [vmem:[#allocation5 + $0x40] ss:$8 sps:$4 sm:$0xff]  }
  0x33   :  { %493 = vmatprep.subr.bf16.mxu0 %v1287_v45  ;;  %534 = vmatprep.subr.bf16.mxu1 %v1289_v46  ;;  %v1300_v45 = vcombine.low %v84_v34, %v88_v35  ;;  %v1291_v46 = vcombine.high %v75_v38, %v79_v39  ;;  %v1283_v54 = vcombine.high %v67_v48, %v71_v49  ;;  %v59_v56 = vld [vmem:[#allocation2 + $0x10] sm:$0xff]  ;;  %v60_v58 = vld [vmem:[#allocation2 + $0x18] sm:$0xff]  ;;  %v1474_v23 = vld [vmem:[#allocation5 + $0x24] ss:$8 sps:$4 sm:$0xff]  }
  0x34   :  { %v63_v57 = vld [vmem:[#allocation2 + $0x30] sm:$0xff]  ;;  %v1475_v26 = vld [vmem:[#allocation5 + $0x120] ss:$8 sps:$4 sm:$0xff]   ;;  %v1489_v34 = vld [vmem:[#allocation5 + $0x104] ss:$8 sps:$4 sm:$0xff]  }
  0x35   :  { %v1275_v62 = vcombine.high %v59_v56, %v63_v57  ;;  %v1274_v1 = vcombine.low %v59_v56, %v63_v57  ;;  %v1444_v3 = vld [vmem:[#allocation5 + $0x74] ss:$8 sps:$4 sm:$0xff]   ;;  %v1469_v22 = vld [vmem:[#allocation5 + $0x130] ss:$8 sps:$4 sm:$0xff]   ;;  %v1520_v56 = vld [vmem:[#allocation5 + $0xa0] ss:$8 sps:$4 sm:$0xff]  }
  0x36   :  { %494 = vmatpush1.bf16.msra.mxu0 %v1286_v51  ;;  %535 = vmatpush1.bf16.msra.mxu1 %v1288_v52  ;;  %v72_v51 = vld [vmem:[#allocation2 + $0x78] sm:$0xff]  ;;  %v1290_v52 = vcombine.low %v75_v38, %v79_v39  ;;  %v1498_v39 = vld [vmem:[#allocation5 + $0xe4] ss:$8 sps:$4 sm:$0xff]   ;;  %v1523_v57 = vld [vmem:[#allocation5 + $0x1a0] ss:$8 sps:$4 sm:$0xff]  }
  0x37   :  { %495 = vmatprep.subr.bf16.mxu0 %v1279_v53  ;;  %536 = vmatprep.subr.bf16.mxu1 %v1281_v55  ;;  %v1292_v53 = vcombine.low %v76_v41, %v80_v42  ;;  %v1285_v55 = vcombine.high %v68_v50, %v72_v51  ;;  %v1456_v11 = vld [vmem:[#allocation5 + $0x54] ss:$8 sps:$4 sm:$0xff]   ;;  %v1493_v38 = vld [vmem:[#allocation5 + $0x1f0] ss:$8 sps:$4 sm:$0xff]   ;;  %v1499_v41 = vld [vmem:[#allocation5 + $0x1e0] ss:$8 sps:$4 sm:$0xff]  }
  0x38   :  { %v1468_v19 = vld [vmem:[#allocation5 + $0x34] ss:$8 sps:$4 sm:$0xff]  }
  0x39   :  { %v1471_v20 = vld [vmem:[#allocation5 + $0x134] ss:$8 sps:$4 sm:$0xff]  }
  0x3a   :  { %496 = vmatpush1.bf16.msra.mxu0 %v1278_v59  ;;  %537 = vmatpush1.bf16.msra.mxu1 %v1280_v60  ;;  %v64_v59 = vld [vmem:[#allocation2 + $0x38] sm:$0xff]  ;;  %v1282_v60 = vcombine.low %v67_v48, %v71_v49  ;;  %v1508_v48 = vld [vmem:[#allocation5 + $0xc0] ss:$8 sps:$4 sm:$0xff]  }
  0x3b   :  { %497 = vmatprep.subr.bf16.mxu0 %v1271_v61  ;;  %538 = vmatprep.subr.bf16.mxu1 %v1273_v63  ;;  %v1284_v61 = vcombine.low %v68_v50, %v72_v51  ;;  %v1277_v63 = vcombine.high %v60_v58, %v64_v59  ;;  %v1276_v2 = vcombine.low %v60_v58, %v64_v59  ;;  %v1480_v27 = vld [vmem:[#allocation5 + $0x14] ss:$8 sps:$4 sm:$0xff]   ;;  %v1511_v49 = vld [vmem:[#allocation5 + $0x1c0] ss:$8 sps:$4 sm:$0xff]  }
  0x3c   :  { %v1492_v35 = vld [vmem:[#allocation5 + $0xf4] ss:$8 sps:$4 sm:$0xff]  }
  0x3d   :  { %v1504_v42 = vld [vmem:[#allocation5 + $0xd4] ss:$8 sps:$4 sm:$0xff]  }
  0x3e   :  { %498 = vmatpush1.bf16.msra.mxu0 %v1270_v4  ;;  %539 = vmatpush1.bf16.msra.mxu1 %v1272_v5  ;;  %v1447_v4 = vld [vmem:[#allocation5 + $0x174] ss:$8 sps:$4 sm:$0xff]   ;;  %v1442_v5 = vld [vmem:[#allocation5 + $0x70] ss:$8 sps:$4 sm:$0xff]  }
  0x3f   :  { %565 = vmatprep.subr.bf16.mxu0 %v1331_v6  ;;  %606 = vmatprep.subr.bf16.mxu1 %v1333_v8  ;;  %v1445_v6 = vld [vmem:[#allocation5 + $0x170] ss:$8 sps:$4 sm:$0xff]   ;;  %v1453_v8 = vld [vmem:[#allocation5 + $0x164] ss:$8 sps:$4 sm:$0xff]   ;;  %v1516_v50 = vld [vmem:[#allocation5 + $0xb4] ss:$8 sps:$4 sm:$0xff]  }
  0x40   :  { %v1519_v51 = vld [vmem:[#allocation5 + $0x1b4] ss:$8 sps:$4 sm:$0xff]  }
  0x41   :  { %516 = vmatmul.mubr.bf16.vlgmr.msra.gmra.mxu0 %v1663_v12  ;;  %557 = vmatmul.mubr.bf16.vlgmr.msra.gmra.mxu1 %v1663_v12  ;;  %v1528_v58 = vld [vmem:[#allocation5 + $0x94] ss:$8 sps:$4 sm:$0xff]  }
  0x42   :  { %566 = vmatpush1.bf16.msra.mxu0 %v1330_v13  ;;  %607 = vmatpush1.bf16.msra.mxu1 %v1332_v14  ;;  %v1459_v13 = vld [vmem:[#allocation5 + $0x154] ss:$8 sps:$4 sm:$0xff]   ;;  %v1454_v14 = vld [vmem:[#allocation5 + $0x50] ss:$8 sps:$4 sm:$0xff]  }
  0x43   :  { %567 = vmatprep.subr.bf16.mxu0 %v1323_v15  ;;  %608 = vmatprep.subr.bf16.mxu1 %v1325_v17  ;;  %v1457_v15 = vld [vmem:[#allocation5 + $0x150] ss:$8 sps:$4 sm:$0xff]   ;;  %v1465_v17 = vld [vmem:[#allocation5 + $0x144] ss:$8 sps:$4 sm:$0xff]   ;;  %v1531_v59 = vld [vmem:[#allocation5 + $0x194] ss:$8 sps:$4 sm:$0xff]  }
  0x44   :  { %597 = vmatprep.mubr.bf16.mxu0 %v1610_v0  ;;  %638 = vmatprep.mubr.bf16.mxu1 %v1610_v0  ;;  %v1299_v0 = vcombine.high %v83_v30, %v87_v31  ;;  %v1481_v30 = vld [vmem:[#allocation5 + $0x110] ss:$8 sps:$4 sm:$0xff]   ;;  %v1484_v31 = vld [vmem:[#allocation5] ss:$8 sps:$4 sm:$0xff]  }
  0x46   :  { %568 = vmatpush1.bf16.msra.mxu0 %v1322_v21  ;;  %609 = vmatpush1.bf16.msra.mxu1 %v1324_v24  ;;  %v1466_v21 = vld [vmem:[#allocation5 + $0x30] ss:$8 sps:$4 sm:$0xff]   ;;  %v1477_v24 = vld [vmem:[#allocation5 + $0x124] ss:$8 sps:$4 sm:$0xff]  }
  0x47   :  { %569 = vmatprep.subr.bf16.mxu0 %v1315_v25  ;;  %610 = vmatprep.subr.bf16.mxu1 %v1317_v28  ;;  %v1472_v25 = vld [vmem:[#allocation5 + $0x20] ss:$8 sps:$4 sm:$0xff]   ;;  %v1483_v28 = vld [vmem:[#allocation5 + $0x114] ss:$8 sps:$4 sm:$0xff]  }
  0x4a   :  { %570 = vmatpush1.bf16.msra.mxu0 %v1314_v29  ;;  %611 = vmatpush1.bf16.msra.mxu1 %v1316_v32  ;;  %v1478_v29 = vld [vmem:[#allocation5 + $0x10] ss:$8 sps:$4 sm:$0xff]   ;;  %v1486_v32 = vld [vmem:[#allocation5 + $0x4] ss:$8 sps:$4 sm:$0xff]  }
  0x4b   :  { %571 = vmatprep.subr.bf16.mxu0 %v1307_v33  ;;  %612 = vmatprep.subr.bf16.mxu1 %v1309_v36  ;;  %v1487_v33 = vld [vmem:[#allocation5 + $0x100] ss:$8 sps:$4 sm:$0xff]   ;;  %v1495_v36 = vld [vmem:[#allocation5 + $0x1f4] ss:$8 sps:$4 sm:$0xff]  }
  0x4e   :  { %572 = vmatpush1.bf16.msra.mxu0 %v1306_v37  ;;  %613 = vmatpush1.bf16.msra.mxu1 %v1308_v40  ;;  %v1490_v37 = vld [vmem:[#allocation5 + $0xf0] ss:$8 sps:$4 sm:$0xff]   ;;  %v1501_v40 = vld [vmem:[#allocation5 + $0x1e4] ss:$8 sps:$4 sm:$0xff]  }
  0x4f   :  { %573 = vmatprep.subr.bf16.mxu0 %v1299_v0  ;;  %614 = vmatprep.subr.bf16.mxu1 %v1301_v43  ;;  %v1496_v0 = vld [vmem:[#allocation5 + $0xe0] ss:$8 sps:$4 sm:$0xff]   ;;  %v1507_v43 = vld [vmem:[#allocation5 + $0x1d4] ss:$8 sps:$4 sm:$0xff]  }
  0x52   :  { %574 = vmatpush1.bf16.msra.mxu0 %v1298_v44  ;;  %615 = vmatpush1.bf16.msra.mxu1 %v1300_v45  ;;  %v1502_v44 = vld [vmem:[#allocation5 + $0xd0] ss:$8 sps:$4 sm:$0xff]  }
  0x53   :  { %575 = vmatprep.subr.bf16.mxu0 %v1291_v46  ;;  %616 = vmatprep.subr.bf16.mxu1 %v1293_v47  ;;  %v1505_v45 = vld [vmem:[#allocation5 + $0x1d0] ss:$8 sps:$4 sm:$0xff]   ;;  %v1510_v46 = vld [vmem:[#allocation5 + $0xc4] ss:$8 sps:$4 sm:$0xff]  }
  0x54   :  { %v1513_v47 = vld [vmem:[#allocation5 + $0x1c4] ss:$8 sps:$4 sm:$0xff]  }
  0x56   :  { %576 = vmatpush1.bf16.msra.mxu0 %v1290_v52  ;;  %617 = vmatpush1.bf16.msra.mxu1 %v1292_v53  ;;  %v1514_v52 = vld [vmem:[#allocation5 + $0xb0] ss:$8 sps:$4 sm:$0xff]  }
  0x57   :  { %577 = vmatprep.subr.bf16.mxu0 %v1283_v54  ;;  %618 = vmatprep.subr.bf16.mxu1 %v1285_v55  ;;  %v1517_v53 = vld [vmem:[#allocation5 + $0x1b0] ss:$8 sps:$4 sm:$0xff]   ;;  %v1522_v54 = vld [vmem:[#allocation5 + $0xa4] ss:$8 sps:$4 sm:$0xff]  }
  0x58   :  { %v1525_v55 = vld [vmem:[#allocation5 + $0x1a4] ss:$8 sps:$4 sm:$0xff]  }
  0x5a   :  { %578 = vmatpush1.bf16.msra.mxu0 %v1282_v60  ;;  %619 = vmatpush1.bf16.msra.mxu1 %v1284_v61  ;;  %v1526_v60 = vld [vmem:[#allocation5 + $0x90] ss:$8 sps:$4 sm:$0xff]  }
  0x5b   :  { %579 = vmatprep.subr.bf16.mxu0 %v1275_v62  ;;  %620 = vmatprep.subr.bf16.mxu1 %v1277_v63  ;;  %v1529_v61 = vld [vmem:[#allocation5 + $0x190] ss:$8 sps:$4 sm:$0xff]   ;;  %v1534_v62 = vld [vmem:[#allocation5 + $0x84] ss:$8 sps:$4 sm:$0xff]  }
  0x5c   :  { %v1537_v63 = vld [vmem:[#allocation5 + $0x184] ss:$8 sps:$4 sm:$0xff]  }
  0x5e   :  { %580 = vmatpush1.bf16.msra.mxu0 %v1274_v1  ;;  %621 = vmatpush1.bf16.msra.mxu1 %v1276_v2  ;;  %v1532_v1 = vld [vmem:[#allocation5 + $0x80] ss:$8 sps:$4 sm:$0xff]  }
  0x5f   :  { %1059 = vmatprep.subr.bf16.mxu0 %v1444_v3  ;;  %1100 = vmatprep.subr.bf16.mxu1 %v1447_v4  ;;  %v1535_v2 = vld [vmem:[#allocation5 + $0x180] ss:$8 sps:$4 sm:$0xff]   ;;  %v1174_v3 = vld [vmem:[%s1802_s5 + $0xf8] sm:$0xff] }
  0x61   :  { %598 = vmatmul.mubr.bf16.vlgmr.msra.gmra.mxu0 %v1663_v12  ;;  %639 = vmatmul.mubr.bf16.vlgmr.msra.gmra.mxu1 %v1663_v12  ;;  %v1463_v12 = vld [vmem:[#allocation5 + $0x140] ss:$8 sps:$4 sm:$0xff]  }
  0x62   :  { %1060 = vmatpush1.bf16.msra.mxu0 %v1442_v5  ;;  %1101 = vmatpush1.bf16.msra.mxu1 %v1445_v6 }
  0x63   :  { %1061 = vmatprep.subr.bf16.mxu0 %v1450_v7  ;;  %1102 = vmatprep.subr.bf16.mxu1 %v1453_v8 }
  0x66   :  { %1062 = vmatpush1.bf16.msra.mxu0 %v1448_v9  ;;  %1103 = vmatpush1.bf16.msra.mxu1 %v1451_v10 }
  0x67   :  { %1063 = vmatprep.subr.bf16.mxu0 %v1456_v11  ;;  %1104 = vmatprep.subr.bf16.mxu1 %v1459_v13  ;;  %v123_v13 = vlaneseq }
  0x6a   :  { %1064 = vmatpush1.bf16.msra.mxu0 %v1454_v14  ;;  %1105 = vmatpush1.bf16.msra.mxu1 %v1457_v15  ;;  %v1674_v14 = vshrl.u32 %v123_v13, 7  ;;  %v1167_v13 = vld [vmem:[%s1802_s5 + $0xc0] sm:$0xff] }
  0x6b   :  { %1065 = vmatprep.subr.bf16.mxu0 %v1462_v16  ;;  %1106 = vmatprep.subr.bf16.mxu1 %v1465_v17  ;;  %v121_v16 = vld [vmem:[%s1799_s2] sm:$0xff] }
  0x6c   :  { %v125_v15 = vsub.s32 0, %v1674_v14  ;;  %v133_v17 = vsub.s32 2, %v1674_v14 }
  0x6e   :  { %1066 = vmatpush1.bf16.msra.mxu0 %v1460_v18  ;;  %1107 = vmatpush1.bf16.msra.mxu1 %v1463_v12  ;;  %v129_v18 = vsub.s32 1, %v1674_v14  ;;  %v141_v12 = vsub.s32 4, %v1674_v14 }
  0x6f   :  { %1067 = vmatprep.subr.bf16.mxu0 %v1468_v19  ;;  %1108 = vmatprep.subr.bf16.mxu1 %v1471_v20  ;;  %v137_v19 = vsub.s32 3, %v1674_v14  ;;  %v149_v20 = vsub.s32 6, %v1674_v14 }
  0x72   :  { %1068 = vmatpush1.bf16.msra.mxu0 %v1466_v21  ;;  %1109 = vmatpush1.bf16.msra.mxu1 %v1469_v22  ;;  %v145_v21 = vsub.s32 5, %v1674_v14  ;;  %v126_v22 = vrot.slane %v121_v16, %v125_v15 }
  0x73   :  { %1069 = vmatprep.subr.bf16.mxu0 %v1474_v23  ;;  %1110 = vmatprep.subr.bf16.mxu1 %v1477_v24  ;;  %v153_v23 = vsub.s32 7, %v1674_v14  ;;  %v134_v24 = vrot.slane %v121_v16, %v133_v17  ;;  %v1166_v17 = vld [vmem:[%s1802_s5 + $0xb8] sm:$0xff]  ;;  %v1398_v14 = vld [vmem:[%s1803_s6] ss:$0 sm:$0xff] }
  0x76   :  { %1070 = vmatpush1.bf16.msra.mxu0 %v1472_v25  ;;  %1111 = vmatpush1.bf16.msra.mxu1 %v1475_v26  ;;  %v130_v25 = vrot.slane %v121_v16, %v129_v18  ;;  %v142_v26 = vrot.slane %v121_v16, %v141_v12  ;;  %v1150_v12 = vld [vmem:[%s1802_s5 + $0x38] sm:$0xff] }
  0x77   :  { %1071 = vmatprep.subr.bf16.mxu0 %v1480_v27  ;;  %1112 = vmatprep.subr.bf16.mxu1 %v1483_v28  ;;  %v138_v27 = vrot.slane %v121_v16, %v137_v19  ;;  %v150_v28 = vrot.slane %v121_v16, %v149_v20  ;;  %v1165_v19 = vld [vmem:[%s1802_s5 + $0xb0] sm:$0xff] }
  0x78   :  { %v1149_v20 = vld [vmem:[%s1802_s5 + $0x30] sm:$0xff] }
  0x7a   :  { %1072 = vmatpush1.bf16.msra.mxu0 %v1478_v29  ;;  %1113 = vmatpush1.bf16.msra.mxu1 %v1481_v30  ;;  %v146_v29 = vrot.slane %v121_v16, %v145_v21  ;;  %v1164_v21 = vld [vmem:[%s1802_s5 + $0xa8] sm:$0xff] }
  0x7b   :  { %1073 = vmatprep.subr.bf16.mxu0 %v1486_v32  ;;  %1114 = vmatprep.subr.bf16.mxu1 %v1489_v34  ;;  %v154_v32 = vrot.slane %v121_v16, %v153_v23  ;;  %v1151_v16 = vld [vmem:[%s1802_s5 + $0x40] sm:$0xff] }
  0x7c   :  { %v1163_v23 = vld [vmem:[%s1802_s5 + $0xa0] sm:$0xff] }
  0x7e   :  { %1074 = vmatpush1.bf16.msra.mxu0 %v1484_v31  ;;  %1115 = vmatpush1.bf16.msra.mxu1 %v1487_v33 }
  0x7f   :  { %1075 = vmatprep.subr.bf16.mxu0 %v1492_v35  ;;  %1116 = vmatprep.subr.bf16.mxu1 %v1495_v36 }
  0x82   :  { %1076 = vmatpush2.bf16.msra.mxu0 %v1490_v37  ;;  %1117 = vmatpush2.bf16.msra.mxu1 %v1493_v38 }
  0x83   :  { %1077 = vmatprep.subr.bf16.mxu0 %v1498_v39  ;;  %1118 = vmatprep.subr.bf16.mxu1 %v1501_v40 }
  0x86   :  { %1078 = vmatpush2.bf16.msra.mxu0 %v1496_v0  ;;  %1119 = vmatpush2.bf16.msra.mxu1 %v1499_v41 }
  0x87   :  { %1079 = vmatprep.subr.bf16.mxu0 %v1504_v42  ;;  %1120 = vmatprep.subr.bf16.mxu1 %v1507_v43 }
  0x8a   :  { %1080 = vmatpush2.bf16.msra.mxu0 %v1502_v44  ;;  %1121 = vmatpush2.bf16.msra.mxu1 %v1505_v45 }
  0x8b   :  { %1081 = vmatprep.subr.bf16.mxu0 %v1510_v46  ;;  %1122 = vmatprep.subr.bf16.mxu1 %v1513_v47 }
  0x8e   :  { %1082 = vmatpush2.bf16.msra.mxu0 %v1508_v48  ;;  %1123 = vmatpush2.bf16.msra.mxu1 %v1511_v49 }
  0x8f   :  { %1083 = vmatprep.subr.bf16.mxu0 %v1516_v50  ;;  %1124 = vmatprep.subr.bf16.mxu1 %v1519_v51 }
  0x92   :  { %1084 = vmatpush2.bf16.msra.mxu0 %v1514_v52  ;;  %1125 = vmatpush2.bf16.msra.mxu1 %v1517_v53 }
  0x93   :  { %1085 = vmatprep.subr.bf16.mxu0 %v1522_v54  ;;  %1126 = vmatprep.subr.bf16.mxu1 %v1525_v55 }
  0x96   :  { %1086 = vmatpush2.bf16.msra.mxu0 %v1520_v56  ;;  %1127 = vmatpush2.bf16.msra.mxu1 %v1523_v57 }
  0x97   :  { %1087 = vmatprep.subr.bf16.mxu0 %v1528_v58  ;;  %1128 = vmatprep.subr.bf16.mxu1 %v1531_v59 }
  0x9a   :  { %1088 = vmatpush2.bf16.msra.mxu0 %v1526_v60  ;;  %1129 = vmatpush2.bf16.msra.mxu1 %v1529_v61  ;;  %v1158_v61 = vld [vmem:[%s1802_s5 + $0x78] sm:$0xff] }
  0x9b   :  { %1089 = vmatprep.subr.bf16.mxu0 %v1534_v62  ;;  %1130 = vmatprep.subr.bf16.mxu1 %v1537_v63  ;;  %v1173_v63 = vld [vmem:[%s1802_s5 + $0xf0] sm:$0xff] }
  0x9e   :  { %1090 = vmatpush2.bf16.msra.mxu0 %v1532_v1  ;;  %1131 = vmatpush2.bf16.msra.mxu1 %v1535_v2  ;;  %v1157_v1 = vld [vmem:[%s1802_s5 + $0x70] sm:$0xff]  ;;  %v1172_v2 = vld [vmem:[%s1802_s5 + $0xe8] sm:$0xff] }
  0x9f   :  { %1399 = vmatprep.subr.mxu0 %v1174_v3  ;;  %v1156_v3 = vld [vmem:[%s1802_s5 + $0x68] sm:$0xff] }
 0x101   :  { %v517_v4 = vpop.f32.mrf.mxu0  ;;  %v558_v5 = vpop.f32.mrf.mxu1 }
 0x102   :  { %v518_v30 = vadd.f32 %v517_v4, %v126_v22  ;;  %v559_v33 = vadd.f32 %v558_v5, %v134_v24  ;;  %v1171_v4 = vld [vmem:[%s1802_s5 + $0xe0] sm:$0xff]  ;;  %v1148_v22 = vld [vmem:[%s1802_s5 + $0x28] sm:$0xff] }
 0x103   :  { %v519_v6 = vpop.f32.mrf.mxu0  ;;  %v560_v7 = vpop.f32.mrf.mxu1  ;;  %v1155_v5 = vld [vmem:[%s1802_s5 + $0x60] sm:$0xff] }
 0x104   :  { %v520_v34 = vadd.f32 %v519_v6, %v130_v25  ;;  %v561_v37 = vadd.f32 %v560_v7, %v138_v27  ;;  %v647_v42 = vmax.f32 %v518_v30, 0.0  ;;  %v649_v46 = vmax.f32 %v559_v33, 0.0  ;;  %v1170_v6 = vld [vmem:[%s1802_s5 + $0xd8] sm:$0xff]  ;;  %v1147_v24 = vld [vmem:[%s1802_s5 + $0x20] sm:$0xff]  ;;  %v1161_v27 = vld [vmem:[%s1802_s5 + $0x90] sm:$0xff] }
 0x105   :  { %v521_v8 = vpop.f32.mrf.mxu0  ;;  %v562_v9 = vpop.f32.mrf.mxu1  ;;  %v1154_v7 = vld [vmem:[%s1802_s5 + $0x58] sm:$0xff]  ;;  %v1144_v30 = vld [vmem:[%s1802_s5 + $0x8] sm:$0xff]  ;;  %v727_v33 = vld [vmem:[%s1801_s4] sm:$0x3] }
 0x106   :  { %v648_v47 = vmax.f32 %v520_v34, 0.0  ;;  %v650_v50 = vmax.f32 %v561_v37, 0.0  ;;  %v1169_v8 = vld [vmem:[%s1802_s5 + $0xd0] sm:$0xff]  ;;  %v1162_v25 = vld [vmem:[%s1802_s5 + $0x98] sm:$0xff]  ;;  %v732_v34 = vrot.slane %v727_v33, %v125_v15 }
 0x107   :  { %v522_v10 = vpop.f32.mrf.mxu0  ;;  %v563_v11 = vpop.f32.mrf.mxu1  ;;  %v1153_v9 = vld [vmem:[%s1802_s5 + $0x50] sm:$0xff] }
 0x108   :  { %v1168_v10 = vld [vmem:[%s1802_s5 + $0xc8] sm:$0xff] }
 0x109   :  { %v1152_v11 = vld [vmem:[%s1802_s5 + $0x48] sm:$0xff] }
 0x121   :  { %v599_v31 = vpop.f32.mrf.mxu0  ;;  %v640_v36 = vpop.f32.mrf.mxu1 }
 0x122   :  { %v600_v35 = vadd.f32 %v599_v31, %v142_v26  ;;  %v641_v38 = vadd.f32 %v640_v36, %v150_v28  ;;  %v1146_v26 = vld [vmem:[%s1802_s5 + $0x18] sm:$0xff]  ;;  %v1145_v28 = vld [vmem:[%s1802_s5 + $0x10] sm:$0xff]  ;;  %v1159_v31 = vld [vmem:[%s1802_s5 + $0x80] sm:$0xff] }
 0x123   :  { %v601_v39 = vpop.f32.mrf.mxu0  ;;  %v642_v41 = vpop.f32.mrf.mxu1 }
 0x124   :  { %v651_v40 = vmax.f32 %v600_v35, 0.0  ;;  %v602_v0 = vadd.f32 %v601_v39, %v146_v29  ;;  %v653_v43 = vmax.f32 %v641_v38, 0.0  ;;  %v643_v44 = vadd.f32 %v642_v41, %v154_v32  ;;  %v1160_v29 = vld [vmem:[%s1802_s5 + $0x88] sm:$0xff]  ;;  %v1143_v32 = vld [vmem:[%s1802_s5] sm:$0xff] }
 0x125   :  { %v603_v45 = vpop.f32.mrf.mxu0  ;;  %v644_v49 = vpop.f32.mrf.mxu1  ;;  %v736_v35 = vrot.slane %v727_v33, %v129_v18 }
 0x126   :  { %v652_v48 = vmax.f32 %v602_v0, 0.0  ;;  %v655_v51 = vmax.f32 %v647_v42, %v651_v40  ;;  %v654_v52 = vmax.f32 %v643_v44, 0.0  ;;  %v657_v54 = vmax.f32 %v649_v46, %v653_v43 }
 0x127   :  { %v604_v53 = vpop.f32.mrf.mxu0  ;;  %v645_v56 = vpop.f32.mrf.mxu1 }
 0x128   :  { %v656_v55 = vmax.f32 %v648_v47, %v652_v48  ;;  %v658_v57 = vmax.f32 %v650_v50, %v654_v52  ;;  %v659_v59 = vpack.c.bf16 %v655_v51, %v655_v51  ;;  %v661_v62 = vpack.c.bf16 %v657_v54, %v657_v54 }
 0x12a   :  { %v660_v58 = vpack.c.bf16 %v656_v55, %v656_v55  ;;  %v662_v60 = vpack.c.bf16 %v658_v57, %v658_v57 }
 0x12c   :  { %1091 = vmatprep.mubr.bf16.mxu0 %v660_v58  ;;  %1132 = vmatprep.mubr.bf16.mxu1 %v662_v60 }
 0x12d   :  { %1092 = vmatmul.mubr.bf16.vlgmr.msra.gmra.mxu0 %v659_v59  ;;  %1133 = vmatmul.mubr.bf16.vlgmr.msra.gmra.mxu1 %v661_v62 }
 0x12e   :  { %1400 = vmatpush3.msra.mxu0 %v1158_v61 }
 0x12f   :  { %1401 = vmatprep.subr.mxu0 %v1173_v63 }
 0x130   :  { %1402 = vmatpush3.msra.mxu0 %v1157_v1 }
 0x131   :  { %1403 = vmatprep.subr.mxu0 %v1172_v2 }
 0x132   :  { %1404 = vmatpush3.msra.mxu0 %v1156_v3 }
 0x133   :  { %1405 = vmatprep.subr.mxu0 %v1171_v4 }
 0x134   :  { %1406 = vmatpush3.msra.mxu0 %v1155_v5 }
 0x135   :  { %1407 = vmatprep.subr.mxu0 %v1170_v6 }
 0x136   :  { %1408 = vmatpush3.msra.mxu0 %v1154_v7 }
 0x137   :  { %1409 = vmatprep.subr.mxu0 %v1169_v8 }
 0x138   :  { %1410 = vmatpush3.msra.mxu0 %v1153_v9 }
 0x139   :  { %1411 = vmatprep.subr.mxu0 %v1168_v10 }
 0x13a   :  { %1412 = vmatpush3.msra.mxu0 %v1152_v11 }
 0x13b   :  { %1413 = vmatprep.subr.mxu0 %v1167_v13 }
 0x13c   :  { %1414 = vmatpush3.msra.mxu0 %v1151_v16 }
 0x13d   :  { %1415 = vmatprep.subr.mxu0 %v1166_v17 }
 0x13e   :  { %1416 = vmatpush3.msra.mxu0 %v1150_v12 }
 0x13f   :  { %1417 = vmatprep.subr.mxu0 %v1165_v19 }
 0x140   :  { %1418 = vmatpush3.msra.mxu0 %v1149_v20 }
 0x141   :  { %1419 = vmatprep.subr.mxu0 %v1164_v21 }
 0x142   :  { %1420 = vmatpush3.msra.mxu0 %v1148_v22 }
 0x143   :  { %1421 = vmatprep.subr.mxu0 %v1163_v23 }
 0x144   :  { %1422 = vmatpush3.msra.mxu0 %v1147_v24 }
 0x145   :  { %1423 = vmatprep.subr.mxu0 %v1162_v25 }
 0x146   :  { %1424 = vmatpush3.msra.mxu0 %v1146_v26 }
 0x147   :  { %1425 = vmatprep.subr.mxu0 %v1161_v27 }
 0x148   :  { %1426 = vmatpush3.msra.mxu0 %v1145_v28 }
 0x149   :  { %1427 = vmatprep.subr.mxu0 %v1160_v29 }
 0x14a   :  { %1428 = vmatpush3.msra.mxu0 %v1144_v30 }
 0x14b   :  { %1429 = vmatprep.subr.mxu0 %v1159_v31 }
 0x14c   :  { %1430 = vmatpush3.msra.mxu0 %v1143_v32 }
 0x1ed   :  { %v1093_v36 = vpop.f32.mrf.mxu0  ;;  %v1134_v38 = vpop.f32.mrf.mxu1 }
 0x1ee   :  { %v1094_v37 = vadd.f32 %v1093_v36, %v732_v34 }
 0x1ef   :  { %v1095_v39 = vpop.f32.mrf.mxu0  ;;  %v1136_v0 = vpop.f32.mrf.mxu1 }
 0x1f0   :  { %v1096_v40 = vadd.f32 %v1095_v39, %v736_v35  ;;  %v1135_v41 = vadd.f32 %v1134_v38, %v1094_v37 }
 0x1f1   :  { %v1097_v42 = vpop.f32.mrf.mxu0  ;;  %v1138_v44 = vpop.f32.mrf.mxu1 }
 0x1f2   :  { %v1137_v43 = vadd.f32 %v1136_v0, %v1096_v40  ;;  %v1141_v48 = vmax.f32 %v1135_v41, 0.0 }
 0x1f3   :  { %v1098_v45 = vpop.f32.mrf.mxu0  ;;  %v1139_v47 = vpop.f32.mrf.mxu1 }
 0x1f4   :  { %v1142_v46 = vmax.f32 %v1137_v43, 0.0 }
 0x1f6   :  { %1246 = vmatprep.mubr.f32.mxu0 %v1142_v46 }
 0x1f7   :  { %1247 = vmatmul.mubr.f32.vlgmr.msra.gmra.mxu0 %v1141_v48 }
 0x2b7   :  { %v1431_v15 = vpop.f32.mrf.mxu0 }
 0x2b9   :  { %v1432_v18 = vpop.f32.mrf.mxu0 }
 0x2ba   :  { %v1433_v49 = vadd.f32 %v1432_v18, %v1431_v15 }
 0x2bc   :  { %v1249_v50 = vadd.f32 %v1433_v49, %v1398_v14 }
 0x2be   :  { %1253 = vst.msk [vmem:[#allocation7] sm:$0x3] %vm1252_vm0, %v1249_v50 }
 0x2bf   :  { %1589 = shalt.err (!%p1586_p0)
}
 0x2c0   :  { %1263 = dma.vmem_to_hbm [thread:$0]  %s1261_s28, 32, %s1804_s7, [#allocation4]  }
 0x2c1   :  { %1602 = dma.done.wait [#allocation4], 32  }
 0x2c2   :  { %1603 = vsyncadd [#allocation4], 4294967264 }
 0x2c3   :  { %1267 = vsyncpa [#allocation3], 1 }
 0x2c4   :  { %1268 = vsyncpa [#allocation6], 1 }
 0x2c5   :  { %1269 = vsyncpa [#allocation4], 1 }

</bundles_post_ra>
